<compile_context>
chip_gen: v7x
topology: tpu7x:2x2x1
jax: 0.10.0
libtpu: 0.0.40
codegen_flags: <defaults>
</compile_context>

<pallas_src>
import jax
import jax.numpy as jnp
from jax.experimental import pallas as pl
from jax.experimental.pallas import tpu as pltpu

SUBLANE = 8           # vreg sublane count
LANE = 128            # vreg lane width
MAX_TB = 8192         # hard cap on batch rows per grid step
MIN_SPLIT_TB = 1024   # never shrink a step below this just to create grid steps


def _round_up(n, m):
    return ((n + m - 1) // m) * m


def _vmem_capacity_bytes():
    """Physical VMEM per TensorCore (128 MiB on v5e/v6e, 64 MiB on v7x)."""
    try:
        cap = getattr(pltpu.get_tpu_info(), "vmem_capacity_bytes", None)
        if cap:
            return int(cap)
    except Exception:
        pass
    return 64 << 20  # conservative fallback (v7x-sized)


def _choose_tb(B, M, C, itemsize, vmem_capacity):
    """Pick the batch-rows-per-grid-step tile size TB."""
    tile_budget = int(vmem_capacity * 0.35)
    c_pad = _round_up(C, LANE)      # classes live on the lane axis
    m_pad = _round_up(M, SUBLANE)   # models live on sublanes inside the block
    # Padded VMEM bytes per batch row: double-buffered input block,
    # double-buffered output block, plus ~4 live (row, C) f32 temporaries
    # (x, e, e/s, acc) from the per-model loop.
    per_row = (2 * m_pad * c_pad * itemsize
               + 2 * c_pad * itemsize
               + 4 * c_pad * 4)
    tb = tile_budget // max(per_row, 1)
    tb = max(SUBLANE, (tb // SUBLANE) * SUBLANE)
    tb = min(tb, MAX_TB)
    # For large batches keep >= ~4 grid steps so the pipeline has prefetch
    # depth and v7x can spread the ("parallel",) batch axis over both
    # TensorCores — but never below MIN_SPLIT_TB rows per step.
    tb = min(tb, max(MIN_SPLIT_TB, _round_up(pl.cdiv(B, 4), SUBLANE)))
    # A full-extent block is always layout-legal (even if B % 8 != 0).
    if tb >= B:
        tb = B
    return tb


def bagging_kernel(x_ref, o_ref):
    # x_ref: (TB, M, C) tile of the input in its natural [B, M, C] layout.
    # o_ref: (TB, C) tile of the output.
    num_models = x_ref.shape[1]
    acc = jnp.zeros(o_ref.shape, jnp.float32)
    # Static (unrolled) per-model loop: keeps only (TB, C) f32 temporaries live
    # instead of an (TB, M, C) f32 copy of the whole tile.
    for m in range(num_models):
        x = x_ref[:, m, :].astype(jnp.float32)          # (TB, C)
        mx = jnp.max(x, axis=-1, keepdims=True)          # (TB, 1) lane reduce
        e = jnp.exp(x - mx)                              # EUP
        s = jnp.sum(e, axis=-1, keepdims=True)           # (TB, 1)
        acc = acc + e / s                                # exact softmax, bag-sum
    o_ref[...] = acc.astype(o_ref.dtype)


def bagging_forward(x):
    """x: [B, M, C] float array -> [B, C] (softmax over C, summed over M)."""
    B, M, C = x.shape
    vmem_capacity = _vmem_capacity_bytes()
    TB = _choose_tb(B, M, C, x.dtype.itemsize, vmem_capacity)
    # TODO(synk): for very large M*C (per-row footprint exceeding the VMEM
    # budget even at TB=8) add a second 'arbitrary' grid axis over model blocks
    # with a VMEM accumulator (pl.when init/store); not needed for bagging-sized M.
    return pl.pallas_call(
        bagging_kernel,
        out_shape=jax.ShapeDtypeStruct((B, C), x.dtype),
        grid_spec=pltpu.PrefetchScalarGridSpec(
            num_scalar_prefetch=0,
            grid=(pl.cdiv(B, TB),),                       # partial last block OK
            in_specs=[pl.BlockSpec((TB, M, C), lambda b: (b, 0, 0))],
            out_specs=pl.BlockSpec((TB, C), lambda b: (b, 0)),
        ),
        compiler_params=pltpu.CompilerParams(
            dimension_semantics=("parallel",),            # batch rows independent
            vmem_limit_bytes=int(vmem_capacity * 0.65),
        ),
    )(x)


def bagging_reference(x):
    return jax.nn.softmax(x.astype(jnp.float32), axis=2).sum(axis=1).astype(x.dtype)


if __name__ == "__main__":
    key = jax.random.PRNGKey(0)
    # batch=2, num_base_models (input_channels)=4, out_classes=16
    B, M, C = 2, 4, 16
    x = jax.random.normal(key, (B, M, C), dtype=jnp.float32)

    fwd = jax.jit(bagging_forward)
    out = jax.block_until_ready(fwd(x))
    ref = bagging_reference(x)
    assert out.shape == (B, C), out.shape
    assert jnp.allclose(out, ref, atol=1e-5, rtol=1e-5), (out, ref)

    # Also exercise the multi-step grid + partial-last-block path.
    x2 = jax.random.normal(jax.random.PRNGKey(1), (2500, M, C), dtype=jnp.float32)
    out2 = jax.block_until_ready(jax.jit(bagging_forward)(x2))
    ref2 = bagging_reference(x2)
    assert out2.shape == (2500, C), out2.shape
    assert jnp.allclose(out2, ref2, atol=1e-5, rtol=1e-5)

    print("KERNEL_OK")
</pallas_src>

<mosaic_0001>
module attributes {stable_mosaic.version = 11 : i64} {
  func.func @bagging_kernel(%arg0: i32, %arg1: memref<2x4x16xf32, #tpu.memory_space<vmem>>, %arg2: memref<2x16xf32, #tpu.memory_space<vmem>>) attributes {dimension_semantics = [#tpu.dimension_semantics<parallel>], iteration_bounds = array<i64: 1>, scalar_prefetch = 0 : i64, scratch_operands = 0 : i64, tpu.core_type = #tpu.core_type<tc>, window_params = [{transform_indices = @transform_0, window_bounds = array<i64: 2, 4, 16>}, {transform_indices = @transform_1, window_bounds = array<i64: 2, 16>}]} {
    %cst = arith.constant 0.000000e+00 : f32
    %0 = vector.broadcast %cst : f32 to vector<2x16xf32>
    %c0 = arith.constant 0 : index
    %c0_0 = arith.constant 0 : index
    %c0_1 = arith.constant 0 : index
    %1 = vector.load %arg1[%c0, %c0_0, %c0_1] : memref<2x4x16xf32, #tpu.memory_space<vmem>>, vector<2x1x16xf32>
    %2 = vector.shape_cast %1 : vector<2x1x16xf32> to vector<2x16xf32>
    %cst_2 = arith.constant dense<0xFF800000> : vector<2xf32>
    %3 = vector.multi_reduction <maximumf>, %2, %cst_2 [1] : vector<2x16xf32> to vector<2xf32>
    %4 = vector.shape_cast %3 : vector<2xf32> to vector<2x1xf32>
    %5 = vector.broadcast %4 : vector<2x1xf32> to vector<2x16xf32>
    %6 = arith.subf %2, %5 : vector<2x16xf32>
    %7 = math.exp %6 : vector<2x16xf32>
    %cst_3 = arith.constant dense<0.000000e+00> : vector<2xf32>
    %8 = vector.multi_reduction <add>, %7, %cst_3 [1] : vector<2x16xf32> to vector<2xf32>
    %9 = vector.shape_cast %8 : vector<2xf32> to vector<2x1xf32>
    %10 = vector.broadcast %9 : vector<2x1xf32> to vector<2x16xf32>
    %11 = arith.divf %7, %10 : vector<2x16xf32>
    %12 = arith.addf %0, %11 : vector<2x16xf32>
    %c0_4 = arith.constant 0 : index
    %c1 = arith.constant 1 : index
    %c0_5 = arith.constant 0 : index
    %13 = vector.load %arg1[%c0_4, %c1, %c0_5] : memref<2x4x16xf32, #tpu.memory_space<vmem>>, vector<2x1x16xf32>
    %14 = vector.shape_cast %13 : vector<2x1x16xf32> to vector<2x16xf32>
    %cst_6 = arith.constant dense<0xFF800000> : vector<2xf32>
    %15 = vector.multi_reduction <maximumf>, %14, %cst_6 [1] : vector<2x16xf32> to vector<2xf32>
    %16 = vector.shape_cast %15 : vector<2xf32> to vector<2x1xf32>
    %17 = vector.broadcast %16 : vector<2x1xf32> to vector<2x16xf32>
    %18 = arith.subf %14, %17 : vector<2x16xf32>
    %19 = math.exp %18 : vector<2x16xf32>
    %cst_7 = arith.constant dense<0.000000e+00> : vector<2xf32>
    %20 = vector.multi_reduction <add>, %19, %cst_7 [1] : vector<2x16xf32> to vector<2xf32>
    %21 = vector.shape_cast %20 : vector<2xf32> to vector<2x1xf32>
    %22 = vector.broadcast %21 : vector<2x1xf32> to vector<2x16xf32>
    %23 = arith.divf %19, %22 : vector<2x16xf32>
    %24 = arith.addf %12, %23 : vector<2x16xf32>
    %c0_8 = arith.constant 0 : index
    %c2 = arith.constant 2 : index
    %c0_9 = arith.constant 0 : index
    %25 = vector.load %arg1[%c0_8, %c2, %c0_9] : memref<2x4x16xf32, #tpu.memory_space<vmem>>, vector<2x1x16xf32>
    %26 = vector.shape_cast %25 : vector<2x1x16xf32> to vector<2x16xf32>
    %cst_10 = arith.constant dense<0xFF800000> : vector<2xf32>
    %27 = vector.multi_reduction <maximumf>, %26, %cst_10 [1] : vector<2x16xf32> to vector<2xf32>
    %28 = vector.shape_cast %27 : vector<2xf32> to vector<2x1xf32>
    %29 = vector.broadcast %28 : vector<2x1xf32> to vector<2x16xf32>
    %30 = arith.subf %26, %29 : vector<2x16xf32>
    %31 = math.exp %30 : vector<2x16xf32>
    %cst_11 = arith.constant dense<0.000000e+00> : vector<2xf32>
    %32 = vector.multi_reduction <add>, %31, %cst_11 [1] : vector<2x16xf32> to vector<2xf32>
    %33 = vector.shape_cast %32 : vector<2xf32> to vector<2x1xf32>
    %34 = vector.broadcast %33 : vector<2x1xf32> to vector<2x16xf32>
    %35 = arith.divf %31, %34 : vector<2x16xf32>
    %36 = arith.addf %24, %35 : vector<2x16xf32>
    %c0_12 = arith.constant 0 : index
    %c3 = arith.constant 3 : index
    %c0_13 = arith.constant 0 : index
    %37 = vector.load %arg1[%c0_12, %c3, %c0_13] : memref<2x4x16xf32, #tpu.memory_space<vmem>>, vector<2x1x16xf32>
    %38 = vector.shape_cast %37 : vector<2x1x16xf32> to vector<2x16xf32>
    %cst_14 = arith.constant dense<0xFF800000> : vector<2xf32>
    %39 = vector.multi_reduction <maximumf>, %38, %cst_14 [1] : vector<2x16xf32> to vector<2xf32>
    %40 = vector.shape_cast %39 : vector<2xf32> to vector<2x1xf32>
    %41 = vector.broadcast %40 : vector<2x1xf32> to vector<2x16xf32>
    %42 = arith.subf %38, %41 : vector<2x16xf32>
    %43 = math.exp %42 : vector<2x16xf32>
    %cst_15 = arith.constant dense<0.000000e+00> : vector<2xf32>
    %44 = vector.multi_reduction <add>, %43, %cst_15 [1] : vector<2x16xf32> to vector<2xf32>
    %45 = vector.shape_cast %44 : vector<2xf32> to vector<2x1xf32>
    %46 = vector.broadcast %45 : vector<2x1xf32> to vector<2x16xf32>
    %47 = arith.divf %43, %46 : vector<2x16xf32>
    %48 = arith.addf %36, %47 : vector<2x16xf32>
    %c0_16 = arith.constant 0 : index
    %c0_17 = arith.constant 0 : index
    %49 = vector.load %arg2[%c0_16, %c0_17] : memref<2x16xf32, #tpu.memory_space<vmem>>, vector<2x16xf32>
    tpu.vector_store %arg2[%c0_16, %c0_17], %48 {strides = array<i32>} : memref<2x16xf32, #tpu.memory_space<vmem>>, vector<2x16xf32>,
    return
  }
  func.func @transform_0(%arg0: i32) -> (i32, i32, i32) {
    %c0_i32 = arith.constant 0 : i32
    %c0_i32_0 = arith.constant 0 : i32
    %c0_i32_1 = arith.constant 0 : i32
    return %arg0, %c0_i32, %c0_i32_0 : i32, i32, i32
  }
  func.func @transform_1(%arg0: i32) -> (i32, i32) {
    %c0_i32 = arith.constant 0 : i32
    %c0_i32_0 = arith.constant 0 : i32
    return %arg0, %c0_i32 : i32, i32
  }
}

</mosaic_0001>

<bundles_post_ra>
// kernel: bagging_forward.1
= control target key start
LH: loop header
LB: loop body
LE: loop exit
PB: predicated region body
PF: predicated region fallthrough
CT: control target
= control target key end

     0   :  { %6 = vsyncpa [#allocation3], 0  ;;  %s338_s0 = inlined_call_operand.hbm [shape: f32[2,4,16], index: 0, kind: input, shape index: {}]   ;;  %s339_s1 = inlined_call_operand.hbm [shape: f32[2,16], index: 1, kind: output, shape index: {}]  }
   0x1   :  { %7 = vsyncpa [#allocation4], 0  ;;  %s282_s6 = smov [#allocation2]   ;;  %s234_s10 = scalar_lea.hbm %s338_s0, 128 }
   0x2   :  { %s13_s7 = sshll.u32 %s282_s6, 4  ;;  %p235_p0 = scmp.ne.s32.totalorder %s338_s0, %s234_s10  ;;  %s14_s7 = int_to_ptr.vmem [resolvable:$true] %s13_s7 }
   0x3   :  { %p238_p1 = scmp.lt.u32.totalorder %s234_s10, %s338_s0 }
   0x5   :  { %p240_p2 = pnand %p238_p1, %p235_p0 }
   0x7   :  { %243 = shalt.err (!%p240_p2)
}
   0x8   :  { %s244_s15 = scalar_lea.vmem %s14_s7, 128  ;;  %p249_p4 = scmp.lt.s32.totalorder %s14_s7, %s14_s7 }
   0x9   :  { %p245_p3 = scmp.ne.s32.totalorder %s14_s7, %s244_s15  ;;  %p250_p5 = scmp.lt.s32.totalorder %s244_s15, %s244_s15 }
   0xb   :  { %p251_p6 = por %p250_p5, %p249_p4 }
   0xd   :  { %p252_p7 = pnand %p251_p6, %p245_p3 }
   0xf   :  { %255 = shalt.err (!%p252_p7)
}
  0x10   :  { %s283_s16 = smov 64   ;;  %s284_s17 = smov 4  }
  0x11   :  { %19 = dma.hbm_to_vmem [thread:$0]  %s338_s0, 128, %s14_s7, [#allocation3], %s283_s16, %s283_s16, %s284_s17  }
  0x12   :  { %278 = dma.done.wait [#allocation3], 128  }
  0x13   :  { %279 = vsyncadd [#allocation3], 4294967168  ;;  %vm28_vm0 = vcmask 1041409   ;;  %v101_v0 = vld [vmem:[#allocation2 + $0x2] sm:$0x1]  ;;  %vm31_vm1 = vcmask 123904  }
  0x14   :  { %v102_v1 = vld [vmem:[#allocation2 + $0x6] sm:$0x1]  ;;  %v23_v3 = vld [vmem:[#allocation2] sm:$0x1]  ;;  %v24_v4 = vld [vmem:[#allocation2 + $0x4] sm:$0x1] }
  0x15   :  { %v105_v2 = vrot.slane %v102_v1, 7  ;;  %v27_v5 = vrot.slane %v24_v4, 7  ;;  %v139_v6 = vld [vmem:[#allocation2 + $0x3] sm:$0x1]  ;;  %v140_v7 = vld [vmem:[#allocation2 + $0x7] sm:$0x1] }
  0x16   :  { %v143_v9 = vrot.slane %v140_v7, 7  ;;  %v63_v10 = vld [vmem:[#allocation2 + $0x1] sm:$0x1]  ;;  %v64_v11 = vld [vmem:[#allocation2 + $0x5] sm:$0x1]  ;;  %s285_s0 = smov [#allocation5]  }
  0x17   :  { %v106_v8 = vsel %vm28_vm0, %v105_v2, %v101_v0  ;;  %v29_v13 = vsel %vm28_vm0, %v27_v5, %v23_v3  ;;  %v67_v14 = vrot.slane %v64_v11, 7  ;;  %s189_s20 = sshll.u32 %s285_s0, 4  ;;  %s190_s20 = int_to_ptr.vmem [resolvable:$true] %s189_s20 }
  0x18   :  { %v108_v12 = vsel %vm31_vm1, %v106_v8, -inf  ;;  %v32_v15 = vsel %vm31_vm1, %v29_v13, -inf  ;;  %v144_v16 = vsel %vm28_vm0, %v143_v9, %v139_v6  ;;  %s256_s21 = scalar_lea.vmem %s190_s20, 32  ;;  %p261_p9 = scmp.lt.s32.totalorder %s190_s20, %s190_s20 }
  0x19   :  { %109 = vmax.xlane.f32.xlu1 %v108_v12  ;;  %33 = vmax.xlane.f32.xlu0 %v32_v15  ;;  %v146_v17 = vsel %vm31_vm1, %v144_v16, -inf  ;;  %v68_v18 = vsel %vm28_vm0, %v67_v14, %v63_v10  ;;  %p257_p8 = scmp.ne.s32.totalorder %s190_s20, %s256_s21  ;;  %p262_p10 = scmp.lt.s32.totalorder %s256_s21, %s256_s21 }
  0x1a   :  { %v70_v19 = vsel %vm31_vm1, %v68_v18, -inf }
  0x1b   :  { %p263_p11 = por %p262_p10, %p261_p9 }
  0x1d   :  { %147 = vmax.xlane.f32.xlu1 %v146_v17  ;;  %71 = vmax.xlane.f32.xlu0 %v70_v19  ;;  %p264_p12 = pnand %p263_p11, %p257_p8 }
  0xa6   :  { %v110_v20 = vpop.xlane.xlu1 %109  ;;  %v34_v23 = vpop.xlane.xlu0 %33 }
  0xa7   :  { %v112_v21 = vrot.slane %v110_v20, 1  ;;  %v115_v22 = vsub.f32 %v101_v0, %v110_v20  ;;  %v36_v24 = vrot.slane %v34_v23, 1  ;;  %v39_v25 = vsub.f32 %v23_v3, %v34_v23 }
  0xa9   :  { %v116_v26 = vsub.f32 %v102_v1, %v112_v21  ;;  %v40_v27 = vsub.f32 %v24_v4, %v36_v24  ;;  %v117_v29 = vmul.f32 1.442695, %v115_v22  ;;  %v41_v34 = vmul.f32 1.442695, %v39_v25 }
  0xaa   :  { %v148_v28 = vpop.xlane.xlu1 %147  ;;  %v72_v33 = vpop.xlane.xlu0 %71 }
  0xab   :  { %v119_v30 = vmul.f32 1.442695, %v116_v26  ;;  %v150_v31 = vrot.slane %v148_v28, 1  ;;  %v153_v32 = vsub.f32 %v139_v6, %v148_v28  ;;  %v43_v35 = vmul.f32 1.442695, %v40_v27 }
  0xac   :  { %v74_v36 = vrot.slane %v72_v33, 1  ;;  %v77_v37 = vsub.f32 %v63_v10, %v72_v33 }
  0xad   :  { %202 = vpow2.f32 %v119_v30  ;;  %v154_v38 = vsub.f32 %v140_v7, %v150_v31  ;;  %v155_v40 = vmul.f32 1.442695, %v153_v32 }
  0xae   :  { %204 = vpow2.f32 %v43_v35  ;;  %v78_v39 = vsub.f32 %v64_v11, %v74_v36  ;;  %v79_v42 = vmul.f32 1.442695, %v77_v37 }
  0xaf   :  { %206 = vpow2.f32 %v117_v29  ;;  %v157_v41 = vmul.f32 1.442695, %v154_v38 }
  0xb0   :  { %208 = vpow2.f32 %v41_v34  ;;  %v81_v43 = vmul.f32 1.442695, %v78_v39 }
  0xb1   :  { %210 = vpow2.f32 %v157_v41 }
  0xb2   :  { %212 = vpow2.f32 %v81_v43 }
  0xb3   :  { %214 = vpow2.f32 %v155_v40 }
  0xb4   :  { %216 = vpow2.f32 %v79_v42 }
  0xb7   :  { %v203_v44 = vpop.eup %202 }
  0xb8   :  { %v205_v45 = vpop.eup %204  ;;  %v123_v48 = vrot.slane %v203_v44, 7 }
  0xb9   :  { %v207_v46 = vpop.eup %206  ;;  %v47_v47 = vrot.slane %v205_v45, 7 }
  0xba   :  { %v209_v49 = vpop.eup %208  ;;  %v124_v55 = vsel %vm28_vm0, %v123_v48, %v207_v46 }
  0xbb   :  { %v211_v50 = vpop.eup %210  ;;  %v48_v51 = vsel %vm28_vm0, %v47_v47, %v209_v49  ;;  %v126_v60 = vsel %vm31_vm1, %v124_v55, 0.0 }
  0xbc   :  { %v213_v52 = vpop.eup %212  ;;  %v50_v53 = vsel %vm31_vm1, %v48_v51, 0.0  ;;  %v161_v57 = vrot.slane %v211_v50, 7 }
  0xbd   :  { %v215_v54 = vpop.eup %214  ;;  %51 = vadd.xlane.f32.xlu0 %v50_v53  ;;  %v85_v56 = vrot.slane %v213_v52, 7 }
  0xbe   :  { %v217_v58 = vpop.eup %216  ;;  %v162_v62 = vsel %vm28_vm0, %v161_v57, %v215_v54 }
  0xbf   :  { %v86_v59 = vsel %vm28_vm0, %v85_v56, %v217_v58  ;;  %v164_v63 = vsel %vm31_vm1, %v162_v62, 0.0 }
  0xc0   :  { %v88_v61 = vsel %vm31_vm1, %v86_v59, 0.0 }
  0xc1   :  { %127 = vadd.xlane.f32.xlu0 %v126_v60  ;;  %89 = vadd.xlane.f32.xlu1 %v88_v61 }
  0xc5   :  { %165 = vadd.xlane.f32.xlu1 %v164_v63 }
 0x14a   :  { %v52_v0 = vpop.xlane.xlu0 %51 }
 0x14b   :  { %v54_v1 = vrot.slane %v52_v0, 1  ;;  %218 = vrcp.f32 %v52_v0 }
 0x14d   :  { %220 = vrcp.f32 %v54_v1 }
 0x14e   :  { %v90_v2 = vpop.xlane.xlu1 %89  ;;  %v128_v3 = vpop.xlane.xlu0 %127 }
 0x14f   :  { %v92_v4 = vrot.slane %v90_v2, 1  ;;  %222 = vrcp.f32 %v90_v2  ;;  %v130_v5 = vrot.slane %v128_v3, 1 }
 0x150   :  { %224 = vrcp.f32 %v128_v3 }
 0x151   :  { %226 = vrcp.f32 %v92_v4 }
 0x152   :  { %228 = vrcp.f32 %v130_v5  ;;  %v166_v6 = vpop.xlane.xlu1 %165 }
 0x153   :  { %v168_v7 = vrot.slane %v166_v6, 1  ;;  %230 = vrcp.f32 %v166_v6 }
 0x155   :  { %232 = vrcp.f32 %v168_v7  ;;  %v219_v8 = vpop.eup %218 }
 0x156   :  { %v58_v12 = vmul.f32 %v219_v8, %v209_v49 }
 0x157   :  { %v221_v9 = vpop.eup %220 }
 0x158   :  { %v60_v16 = vmul.f32 %v221_v9, %v205_v45 }
 0x159   :  { %v223_v10 = vpop.eup %222 }
 0x15a   :  { %v225_v11 = vpop.eup %224  ;;  %v96_v13 = vmul.f32 %v223_v10, %v217_v58 }
 0x15b   :  { %v227_v14 = vpop.eup %226  ;;  %v134_v20 = vmul.f32 %v225_v11, %v207_v46 }
 0x15c   :  { %v229_v15 = vpop.eup %228  ;;  %v98_v17 = vmul.f32 %v227_v14, %v213_v52  ;;  %v99_v18 = vadd.f32 %v96_v13, %v58_v12 }
 0x15d   :  { %v231_v19 = vpop.eup %230  ;;  %v136_v21 = vmul.f32 %v229_v15, %v203_v44 }
 0x15e   :  { %v100_v22 = vadd.f32 %v98_v17, %v60_v16  ;;  %v137_v24 = vadd.f32 %v134_v20, %v99_v18  ;;  %v172_v26 = vmul.f32 %v231_v19, %v215_v54 }
 0x15f   :  { %v233_v23 = vpop.eup %232 }
 0x160   :  { %v138_v25 = vadd.f32 %v136_v21, %v100_v22  ;;  %v174_v27 = vmul.f32 %v233_v23, %v211_v50  ;;  %v175_v29 = vadd.f32 %v172_v26, %v137_v24 }
 0x162   :  { %v176_v28 = vadd.f32 %v174_v27, %v138_v25 }
 0x164   :  { %v179_v30 = vrot.slane %v176_v28, 7 }
 0x166   :  { %v180_v31 = vsel %vm28_vm0, %v179_v30, %v175_v29 }
 0x167   :  { %182 = vst.msk [vmem:[#allocation5] sm:$0x3] %vm31_vm1, %v180_v31 }
 0x168   :  { %267 = shalt.err (!%p264_p12)
}
 0x169   :  { %s268_s24 = scalar_lea.hbm %s339_s1, 32 }
 0x16a   :  { %p269_p13 = scmp.ne.s32.totalorder %s339_s1, %s268_s24  ;;  %p272_p0 = scmp.lt.u32.totalorder %s268_s24, %s339_s1 }
 0x16c   :  { %p274_p1 = pnand %p272_p0, %p269_p13 }
 0x16e   :  { %277 = shalt.err (!%p274_p1)
}
 0x16f   :  { %192 = dma.vmem_to_hbm [thread:$0]  %s190_s20, 32, %s339_s1, [#allocation4]  }
 0x170   :  { %280 = dma.done.wait [#allocation4], 32  }
 0x171   :  { %281 = vsyncadd [#allocation4], 4294967264 }
 0x172   :  { %196 = vsyncpa [#allocation3], 1 }
 0x173   :  { %197 = vsyncpa [#allocation4], 1 }

</bundles_post_ra>
